<compile_context>
chip_gen: v5e
topology: v5e:2x2
jax: 0.10.0
libtpu: 0.0.40
codegen_flags: <defaults>
</compile_context>

<pallas_src>
import functools

import jax
import jax.numpy as jnp
from jax.experimental import pallas as pl
from jax.experimental.pallas import tpu as pltpu


def _round_up(n, m):
    return ((n + m - 1) // m) * m


def _simple_rnn_kernel(x_ref, w_in_ref, b_in_ref, wo_ref, bo_ref,
                       out_ref, state_ref,
                       kv_scr, g_scr, q_scr, att_scr,
                       *, T, H, K, V, Kp, Vp, Op):
    Bb = x_ref.shape[0]
    mxu_dt = w_in_ref.dtype

    # ---- fused q|k|g|v projection: one MXU matmul over all Bb*T tokens ----
    x = x_ref[...].reshape(Bb * T, H).astype(mxu_dt)
    proj = jnp.dot(x, w_in_ref[...], preferred_element_type=jnp.float32)
    proj = proj + b_in_ref[...]                       # (Bb*T, 3*Kp+Vp) in f32

    # Lane-aligned segment slices; sigmoid only where the module applies it.
    q_all = proj[:, 0:K]                              # (Bb*T, K)
    k_all = jax.nn.sigmoid(proj[:, Kp:Kp + K])        # (Bb*T, K)
    g_all = jax.nn.sigmoid(proj[:, 2 * Kp:2 * Kp + K])
    v_all = proj[:, 3 * Kp:3 * Kp + Vp]               # (Bb*T, Vp), pad lanes == 0

    # ---- hoist the K lane->sublane relayouts out of the time loop ----
    q3 = q_all.reshape(Bb, T, K)[:, :, :, None]       # (Bb, T, K, 1)
    k3 = k_all.reshape(Bb, T, K)[:, :, :, None]
    g3 = g_all.reshape(Bb, T, K)[:, :, :, None]
    v3 = v_all.reshape(Bb, T, 1, Vp)
    kv_scr[...] = k3 * v3                             # k (x) v for all T at once
    g_scr[...] = jnp.broadcast_to(g3, (Bb, T, K, Vp))
    q_scr[...] = jnp.broadcast_to(q3, (Bb, T, K, Vp))

    # ---- gated recurrence over time (VPU FMAs + one sublane reduce/step) ----
    state = jnp.zeros((Bb, K, Vp), dtype=jnp.float32)
    for i in range(T):          # T is small & static; see TODO(synk) above
        state = state * g_scr[:, i, :, :] + kv_scr[:, i, :, :]
        att_scr[:, i, :] = jnp.sum(q_scr[:, i, :, :] * state, axis=1)  # (Bb, Vp)

    # ---- output projection: one MXU matmul over all Bb*T rows ----
    att = att_scr[...].reshape(Bb * T, Vp).astype(wo_ref.dtype)
    out = jnp.dot(att, wo_ref[...], preferred_element_type=jnp.float32)
    out = out + bo_ref[...]                           # (Bb*T, Op)

    out_ref[...] = out.reshape(Bb, T, Op).astype(out_ref.dtype)
    state_ref[...] = state[:, :, :V].astype(state_ref.dtype)


def fuse_params(params, mxu_dtype=jnp.float32):
    """Fuse + lane-align q/k/g/v projections; pad the output projection.

    Fused-weight column layout (all offsets multiples of 128):
        [0, Kp)          query
        [Kp, 2*Kp)       key   (sigmoid in-kernel)
        [2*Kp, 3*Kp)     gate  (sigmoid in-kernel)
        [3*Kp, 3*Kp+Vp)  value
    Weights are stored in `mxu_dtype` (bf16 halves their DMA bytes); biases
    stay f32 since they are added after the f32 MXU accumulation.
    """
    H, K = params["wq"].shape
    V = params["wv"].shape[1]
    O = params["wo"].shape[1]
    Kp = _round_up(K, 128)
    Vp = _round_up(V, 128)
    Op = _round_up(O, 128)

    def pad_cols(a, width):
        return jnp.pad(a, ((0, 0), (0, width - a.shape[1])))

    w_in = jnp.concatenate([
        pad_cols(params["wq"], Kp), pad_cols(params["wk"], Kp),
        pad_cols(params["wg"], Kp), pad_cols(params["wv"], Vp)], axis=1)
    b_in = jnp.concatenate([
        pad_cols(params["bq"], Kp), pad_cols(params["bk"], Kp),
        pad_cols(params["bg"], Kp), pad_cols(params["bv"], Vp)], axis=1)
    wo = jnp.pad(params["wo"], ((0, Vp - V), (0, Op - O)))
    bo = pad_cols(params["bo"], Op)

    return {
        "w_in": w_in.astype(mxu_dtype), "b_in": b_in.astype(jnp.float32),
        "wo": wo.astype(mxu_dtype), "bo": bo.astype(jnp.float32),
        "hidden_dim": int(H), "key_dim": int(K), "value_dim": int(V),
        "output_dim": int(O), "key_pad": int(Kp), "value_pad": int(Vp),
        "output_pad": int(Op),
    }


def simple_rnn(hidden_state, fused, *, batch_block=None):
    """hidden_state: (B, T, H) float32. fused: output of fuse_params().

    Returns (output (B, T, O), final_state (B, K, V)) per SimpleRNN.forward.
    """
    B, T, H = hidden_state.shape
    assert H == fused["hidden_dim"]
    K, V, O = fused["key_dim"], fused["value_dim"], fused["output_dim"]
    Kp, Vp, Op = fused["key_pad"], fused["value_pad"], fused["output_pad"]
    P = 3 * Kp + Vp

    # Leading "parallel" grid axis over batch: shards work across the two
    # TensorCores on v7x (serial, near-free loop on v5e/v6e) and bounds the
    # VMEM resident per grid step. batch_block must divide B.
    if batch_block is None:
        batch_block = B // 2 if (B >= 2 and B % 2 == 0) else B
    assert B % batch_block == 0
    Bb = batch_block
    grid = (B // Bb,)

    kernel = functools.partial(
        _simple_rnn_kernel, T=T, H=H, K=K, V=V, Kp=Kp, Vp=Vp, Op=Op)

    w_bytes = jnp.dtype(fused["w_in"].dtype).itemsize
    cost = pl.CostEstimate(
        flops=2 * B * T * H * P + 2 * B * T * Vp * Op + 6 * B * T * K * Vp,
        transcendentals=2 * B * T * K,
        bytes_accessed=(4 * B * T * H + w_bytes * (H * P + Vp * Op)
                        + 4 * (P + Op) + 4 * B * T * Op + 4 * B * K * V),
    )

    # Rough resident-VMEM estimate per grid step (double-buffered I/O blocks +
    # weights + scratch) with generous headroom; keeps v7x's 64 MiB happy.
    vmem_est = (4 * (2 * (Bb * T * H + Bb * T * Op + Bb * K * V)
                     + 3 * Bb * T * K * Vp + Bb * T * Vp)
                + 2 * w_bytes * (H * P + Vp * Op) + 8 * (P + Op))
    vmem_limit = int(min(max(4 * vmem_est, 8 * 1024 * 1024), 64 * 1024 * 1024))

    out_pad, state = pl.pallas_call(
        kernel,
        out_shape=(
            jax.ShapeDtypeStruct((B, T, Op), hidden_state.dtype),
            jax.ShapeDtypeStruct((B, K, V), hidden_state.dtype),
        ),
        grid_spec=pltpu.PrefetchScalarGridSpec(
            num_scalar_prefetch=0,
            grid=grid,
            in_specs=[
                pl.BlockSpec((Bb, T, H), lambda b: (b, 0, 0)),    # x
                pl.BlockSpec((H, P), lambda b: (0, 0)),           # fused W_in
                pl.BlockSpec((1, P), lambda b: (0, 0)),           # fused b_in
                pl.BlockSpec((Vp, Op), lambda b: (0, 0)),         # W_out (padded)
                pl.BlockSpec((1, Op), lambda b: (0, 0)),          # b_out (padded)
            ],
            out_specs=[
                pl.BlockSpec((Bb, T, Op), lambda b: (b, 0, 0)),
                pl.BlockSpec((Bb, K, V), lambda b: (b, 0, 0)),
            ],
            scratch_shapes=[
                pltpu.VMEM((Bb, T, K, Vp), jnp.float32),   # k (x) v, all steps
                pltpu.VMEM((Bb, T, K, Vp), jnp.float32),   # gate, V-broadcast
                pltpu.VMEM((Bb, T, K, Vp), jnp.float32),   # query, V-broadcast
                pltpu.VMEM((Bb, T, Vp), jnp.float32),      # per-step attention
            ],
        ),
        compiler_params=pltpu.CompilerParams(
            dimension_semantics=("parallel",),
            vmem_limit_bytes=vmem_limit),
        cost_estimate=cost,
    )(hidden_state, fused["w_in"], fused["b_in"], fused["wo"], fused["bo"])

    # TODO(synk): at production B*T, consider consuming the Op-padded output
    # downstream instead of this extra HBM slice pass (lane-dense store vs
    # padded writeback trade-off from the perf review).
    return out_pad[..., :O], state


def _reference(hidden_state, params):
    """Pure-JAX reference mirroring the PyTorch forward."""
    q = hidden_state @ params["wq"] + params["bq"][0]
    k = jax.nn.sigmoid(hidden_state @ params["wk"] + params["bk"][0])
    g = jax.nn.sigmoid(hidden_state @ params["wg"] + params["bg"][0])
    v = hidden_state @ params["wv"] + params["bv"][0]
    B, T, _ = hidden_state.shape
    K = params["wq"].shape[1]
    V = params["wv"].shape[1]
    state = jnp.zeros((B, K, V), dtype=hidden_state.dtype)
    outs = []
    for i in range(T):
        kv = k[:, i, :, None] * v[:, i, None, :]
        state = state * g[:, i, :, None] + kv
        att = jnp.sum(q[:, i, :, None] * state, axis=1)
        outs.append(att @ params["wo"] + params["bo"][0])
    return jnp.stack(outs, axis=1), state


if __name__ == "__main__":
    B, T, H = 2, 8, 32
    K, V, O = 16, 32, 24

    key = jax.random.PRNGKey(0)
    keys = jax.random.split(key, 11)

    def init_linear(kw, kb, in_dim, out_dim):
        w = jax.random.normal(kw, (in_dim, out_dim), jnp.float32) * 0.1
        b = jax.random.normal(kb, (1, out_dim), jnp.float32) * 0.1
        return w, b

    wq, bq = init_linear(keys[0], keys[1], H, K)
    wk, bk = init_linear(keys[2], keys[3], H, K)
    wg, bg = init_linear(keys[4], keys[5], H, K)
    wv, bv = init_linear(keys[6], keys[7], H, V)
    wo, bo = init_linear(keys[8], keys[9], V, O)

    params = dict(wq=wq, bq=bq, wk=wk, bk=bk, wg=wg, bg=bg,
                  wv=wv, bv=bv, wo=wo, bo=bo)
    x = jax.random.normal(keys[10], (B, T, H), jnp.float32)

    ref_out, ref_state = _reference(x, params)

    # f32 MXU operands: matches the f32 PyTorch module numerics tightly.
    fused_f32 = fuse_params(params)
    out, final_state = simple_rnn(x, fused_f32)
    jax.block_until_ready(out)
    jax.block_until_ready(final_state)
    assert jnp.allclose(out, ref_out, atol=1e-5, rtol=1e-5)
    assert jnp.allclose(final_state, ref_state, atol=1e-5, rtol=1e-5)

    # bf16 MXU operands with f32 accumulation (perf-review item): recurrence
    # and sigmoid stay f32, so only the two matmuls see bf16 rounding; the
    # tolerance is loosened accordingly.
    fused_bf16 = fuse_params(params, mxu_dtype=jnp.bfloat16)
    out_bf, state_bf = simple_rnn(x, fused_bf16)
    jax.block_until_ready(out_bf)
    jax.block_until_ready(state_bf)
    assert jnp.allclose(out_bf, ref_out, atol=1e-1, rtol=1e-1)
    assert jnp.allclose(state_bf, ref_state, atol=1e-1, rtol=1e-1)

    print("KERNEL_OK")
</pallas_src>

<mosaic_0001>
module attributes {stable_mosaic.version = 11 : i64} {
  func.func @_simple_rnn_kernel(%arg0: i32, %arg1: memref<1x8x32xf32, #tpu.memory_space<vmem>>, %arg2: memref<32x512xf32, #tpu.memory_space<vmem>>, %arg3: memref<1x512xf32, #tpu.memory_space<vmem>>, %arg4: memref<128x128xf32, #tpu.memory_space<vmem>>, %arg5: memref<1x128xf32, #tpu.memory_space<vmem>>, %arg6: memref<1x8x128xf32, #tpu.memory_space<vmem>>, %arg7: memref<1x16x32xf32, #tpu.memory_space<vmem>>, %arg8: memref<1x8x16x128xf32, #tpu.memory_space<vmem>>, %arg9: memref<1x8x16x128xf32, #tpu.memory_space<vmem>>, %arg10: memref<1x8x16x128xf32, #tpu.memory_space<vmem>>, %arg11: memref<1x8x128xf32, #tpu.memory_space<vmem>>) attributes {dimension_semantics = [#tpu.dimension_semantics<parallel>], iteration_bounds = array<i64: 2>, scalar_prefetch = 0 : i64, scratch_operands = 4 : i64, tpu.core_type = #tpu.core_type<tc>, window_params = [{transform_indices = @transform_0, window_bounds = array<i64: 1, 8, 32>}, {pipeline_mode = #tpu.pipeline_mode<synchronous>, transform_indices = @transform_1, window_bounds = array<i64: 32, 512>}, {pipeline_mode = #tpu.pipeline_mode<synchronous>, transform_indices = @transform_2, window_bounds = array<i64: 1, 512>}, {pipeline_mode = #tpu.pipeline_mode<synchronous>, transform_indices = @transform_3, window_bounds = array<i64: 128, 128>}, {pipeline_mode = #tpu.pipeline_mode<synchronous>, transform_indices = @transform_4, window_bounds = array<i64: 1, 128>}, {transform_indices = @transform_5, window_bounds = array<i64: 1, 8, 128>}, {transform_indices = @transform_6, window_bounds = array<i64: 1, 16, 32>}]} {
    %c0 = arith.constant 0 : index
    %c0_0 = arith.constant 0 : index
    %c0_1 = arith.constant 0 : index
    %0 = vector.load %arg1[%c0, %c0_0, %c0_1] : memref<1x8x32xf32, #tpu.memory_space<vmem>>, vector<1x8x32xf32>
    %1 = vector.shape_cast %0 : vector<1x8x32xf32> to vector<8x32xf32>
    %c0_2 = arith.constant 0 : index
    %c0_3 = arith.constant 0 : index
    %2 = vector.load %arg2[%c0_2, %c0_3] : memref<32x512xf32, #tpu.memory_space<vmem>>, vector<32x512xf32>
    %cst = arith.constant dense<0.000000e+00> : vector<8x512xf32>
    %3 = tpu.matmul %1, %2, %cst {dimension_numbers = #tpu.dot_dimension_numbers<[1], [0], [0], [1], [0, 0, 1, 1], [], []>} : vector<8x32xf32>, vector<32x512xf32>, vector<8x512xf32> -> vector<8x512xf32>
    %c0_4 = arith.constant 0 : index
    %c0_5 = arith.constant 0 : index
    %4 = vector.load %arg3[%c0_4, %c0_5] : memref<1x512xf32, #tpu.memory_space<vmem>>, vector<1x512xf32>
    %5 = vector.broadcast %4 : vector<1x512xf32> to vector<8x512xf32>
    %6 = arith.addf %3, %5 : vector<8x512xf32>
    %7 = vector.extract_strided_slice %6 {offsets = [0, 0], sizes = [8, 16], strides = [1, 1]} : vector<8x512xf32> to vector<8x16xf32>
    %8 = vector.extract_strided_slice %6 {offsets = [0, 128], sizes = [8, 16], strides = [1, 1]} : vector<8x512xf32> to vector<8x16xf32>
    %9 = arith.negf %8 : vector<8x16xf32>
    %10 = math.exp %9 : vector<8x16xf32>
    %cst_6 = arith.constant 1.000000e+00 : f32
    %11 = vector.broadcast %cst_6 : f32 to vector<8x16xf32>
    %12 = arith.addf %11, %10 : vector<8x16xf32>
    %13 = arith.divf %11, %12 : vector<8x16xf32>
    %14 = vector.extract_strided_slice %6 {offsets = [0, 256], sizes = [8, 16], strides = [1, 1]} : vector<8x512xf32> to vector<8x16xf32>
    %15 = arith.negf %14 : vector<8x16xf32>
    %16 = math.exp %15 : vector<8x16xf32>
    %cst_7 = arith.constant 1.000000e+00 : f32
    %17 = vector.broadcast %cst_7 : f32 to vector<8x16xf32>
    %18 = arith.addf %17, %16 : vector<8x16xf32>
    %19 = arith.divf %17, %18 : vector<8x16xf32>
    %20 = vector.extract_strided_slice %6 {offsets = [0, 384], sizes = [8, 128], strides = [1, 1]} : vector<8x512xf32> to vector<8x128xf32>
    %21 = vector.shape_cast %7 : vector<8x16xf32> to vector<1x8x16xf32>
    %22 = vector.shape_cast %21 : vector<1x8x16xf32> to vector<1x8x16x1xf32>
    %23 = vector.shape_cast %13 : vector<8x16xf32> to vector<1x8x16xf32>
    %24 = vector.shape_cast %23 : vector<1x8x16xf32> to vector<1x8x16x1xf32>
    %25 = vector.shape_cast %19 : vector<8x16xf32> to vector<1x8x16xf32>
    %26 = vector.shape_cast %25 : vector<1x8x16xf32> to vector<1x8x16x1xf32>
    %27 = vector.shape_cast %20 : vector<8x128xf32> to vector<1x8x1x128xf32>
    %28 = vector.broadcast %24 : vector<1x8x16x1xf32> to vector<1x8x16x128xf32>
    %29 = vector.broadcast %27 : vector<1x8x1x128xf32> to vector<1x8x16x128xf32>
    %30 = arith.mulf %28, %29 : vector<1x8x16x128xf32>
    %c0_8 = arith.constant 0 : index
    %c0_9 = arith.constant 0 : index
    %c0_10 = arith.constant 0 : index
    %c0_11 = arith.constant 0 : index
    %31 = vector.load %arg8[%c0_8, %c0_9, %c0_10, %c0_11] : memref<1x8x16x128xf32, #tpu.memory_space<vmem>>, vector<1x8x16x128xf32>
    tpu.vector_store %arg8[%c0_8, %c0_9, %c0_10, %c0_11], %30 {strides = array<i32>} : memref<1x8x16x128xf32, #tpu.memory_space<vmem>>, vector<1x8x16x128xf32>,
    %32 = vector.shape_cast %26 : vector<1x8x16x1xf32> to vector<1x8x16x1xf32>
    %33 = vector.broadcast %32 : vector<1x8x16x1xf32> to vector<1x8x16x128xf32>
    %c0_12 = arith.constant 0 : index
    %c0_13 = arith.constant 0 : index
    %c0_14 = arith.constant 0 : index
    %c0_15 = arith.constant 0 : index
    %34 = vector.load %arg9[%c0_12, %c0_13, %c0_14, %c0_15] : memref<1x8x16x128xf32, #tpu.memory_space<vmem>>, vector<1x8x16x128xf32>
    tpu.vector_store %arg9[%c0_12, %c0_13, %c0_14, %c0_15], %33 {strides = array<i32>} : memref<1x8x16x128xf32, #tpu.memory_space<vmem>>, vector<1x8x16x128xf32>,
    %35 = vector.shape_cast %22 : vector<1x8x16x1xf32> to vector<1x8x16x1xf32>
    %36 = vector.broadcast %35 : vector<1x8x16x1xf32> to vector<1x8x16x128xf32>
    %c0_16 = arith.constant 0 : index
    %c0_17 = arith.constant 0 : index
    %c0_18 = arith.constant 0 : index
    %c0_19 = arith.constant 0 : index
    %37 = vector.load %arg10[%c0_16, %c0_17, %c0_18, %c0_19] : memref<1x8x16x128xf32, #tpu.memory_space<vmem>>, vector<1x8x16x128xf32>
    tpu.vector_store %arg10[%c0_16, %c0_17, %c0_18, %c0_19], %36 {strides = array<i32>} : memref<1x8x16x128xf32, #tpu.memory_space<vmem>>, vector<1x8x16x128xf32>,
    %cst_20 = arith.constant 0.000000e+00 : f32
    %38 = vector.broadcast %cst_20 : f32 to vector<1x16x128xf32>
    %c0_21 = arith.constant 0 : index
    %c0_22 = arith.constant 0 : index
    %c0_23 = arith.constant 0 : index
    %c0_24 = arith.constant 0 : index
    %39 = vector.load %arg9[%c0_21, %c0_22, %c0_23, %c0_24] : memref<1x8x16x128xf32, #tpu.memory_space<vmem>>, vector<1x1x16x128xf32>
    %40 = vector.shape_cast %39 : vector<1x1x16x128xf32> to vector<1x16x128xf32>
    %41 = arith.mulf %38, %40 : vector<1x16x128xf32>
    %c0_25 = arith.constant 0 : index
    %c0_26 = arith.constant 0 : index
    %c0_27 = arith.constant 0 : index
    %c0_28 = arith.constant 0 : index
    %42 = vector.load %arg8[%c0_25, %c0_26, %c0_27, %c0_28] : memref<1x8x16x128xf32, #tpu.memory_space<vmem>>, vector<1x1x16x128xf32>
    %43 = vector.shape_cast %42 : vector<1x1x16x128xf32> to vector<1x16x128xf32>
    %44 = arith.addf %41, %43 : vector<1x16x128xf32>
    %c0_29 = arith.constant 0 : index
    %c0_30 = arith.constant 0 : index
    %c0_31 = arith.constant 0 : index
    %c0_32 = arith.constant 0 : index
    %45 = vector.load %arg10[%c0_29, %c0_30, %c0_31, %c0_32] : memref<1x8x16x128xf32, #tpu.memory_space<vmem>>, vector<1x1x16x128xf32>
    %46 = vector.shape_cast %45 : vector<1x1x16x128xf32> to vector<1x16x128xf32>
    %47 = arith.mulf %46, %44 : vector<1x16x128xf32>
    %cst_33 = arith.constant dense<0.000000e+00> : vector<1x128xf32>
    %48 = vector.multi_reduction <add>, %47, %cst_33 [1] : vector<1x16x128xf32> to vector<1x128xf32>
    %c0_34 = arith.constant 0 : index
    %c0_35 = arith.constant 0 : index
    %c0_36 = arith.constant 0 : index
    %49 = vector.load %arg11[%c0_34, %c0_35, %c0_36] : memref<1x8x128xf32, #tpu.memory_space<vmem>>, vector<1x1x128xf32>
    %50 = vector.shape_cast %49 : vector<1x1x128xf32> to vector<1x128xf32>
    %51 = vector.shape_cast %48 : vector<1x128xf32> to vector<1x1x128xf32>
    tpu.vector_store %arg11[%c0_34, %c0_35, %c0_36], %51 {strides = array<i32>} : memref<1x8x128xf32, #tpu.memory_space<vmem>>, vector<1x1x128xf32>,
    %c0_37 = arith.constant 0 : index
    %c1 = arith.constant 1 : index
    %c0_38 = arith.constant 0 : index
    %c0_39 = arith.constant 0 : index
    %52 = vector.load %arg9[%c0_37, %c1, %c0_38, %c0_39] : memref<1x8x16x128xf32, #tpu.memory_space<vmem>>, vector<1x1x16x128xf32>
    %53 = vector.shape_cast %52 : vector<1x1x16x128xf32> to vector<1x16x128xf32>
    %54 = arith.mulf %44, %53 : vector<1x16x128xf32>
    %c0_40 = arith.constant 0 : index
    %c1_41 = arith.constant 1 : index
    %c0_42 = arith.constant 0 : index
    %c0_43 = arith.constant 0 : index
    %55 = vector.load %arg8[%c0_40, %c1_41, %c0_42, %c0_43] : memref<1x8x16x128xf32, #tpu.memory_space<vmem>>, vector<1x1x16x128xf32>
    %56 = vector.shape_cast %55 : vector<1x1x16x128xf32> to vector<1x16x128xf32>
    %57 = arith.addf %54, %56 : vector<1x16x128xf32>
    %c0_44 = arith.constant 0 : index
    %c1_45 = arith.constant 1 : index
    %c0_46 = arith.constant 0 : index
    %c0_47 = arith.constant 0 : index
    %58 = vector.load %arg10[%c0_44, %c1_45, %c0_46, %c0_47] : memref<1x8x16x128xf32, #tpu.memory_space<vmem>>, vector<1x1x16x128xf32>
    %59 = vector.shape_cast %58 : vector<1x1x16x128xf32> to vector<1x16x128xf32>
    %60 = arith.mulf %59, %57 : vector<1x16x128xf32>
    %cst_48 = arith.constant dense<0.000000e+00> : vector<1x128xf32>
    %61 = vector.multi_reduction <add>, %60, %cst_48 [1] : vector<1x16x128xf32> to vector<1x128xf32>
    %c0_49 = arith.constant 0 : index
    %c1_50 = arith.constant 1 : index
    %c0_51 = arith.constant 0 : index
    %62 = vector.load %arg11[%c0_49, %c1_50, %c0_51] : memref<1x8x128xf32, #tpu.memory_space<vmem>>, vector<1x1x128xf32>
    %63 = vector.shape_cast %62 : vector<1x1x128xf32> to vector<1x128xf32>
    %64 = vector.shape_cast %61 : vector<1x128xf32> to vector<1x1x128xf32>
    tpu.vector_store %arg11[%c0_49, %c1_50, %c0_51], %64 {strides = array<i32>} : memref<1x8x128xf32, #tpu.memory_space<vmem>>, vector<1x1x128xf32>,
    %c0_52 = arith.constant 0 : index
    %c2 = arith.constant 2 : index
    %c0_53 = arith.constant 0 : index
    %c0_54 = arith.constant 0 : index
    %65 = vector.load %arg9[%c0_52, %c2, %c0_53, %c0_54] : memref<1x8x16x128xf32, #tpu.memory_space<vmem>>, vector<1x1x16x128xf32>
    %66 = vector.shape_cast %65 : vector<1x1x16x128xf32> to vector<1x16x128xf32>
    %67 = arith.mulf %57, %66 : vector<1x16x128xf32>
    %c0_55 = arith.constant 0 : index
    %c2_56 = arith.constant 2 : index
    %c0_57 = arith.constant 0 : index
    %c0_58 = arith.constant 0 : index
    %68 = vector.load %arg8[%c0_55, %c2_56, %c0_57, %c0_58] : memref<1x8x16x128xf32, #tpu.memory_space<vmem>>, vector<1x1x16x128xf32>
    %69 = vector.shape_cast %68 : vector<1x1x16x128xf32> to vector<1x16x128xf32>
    %70 = arith.addf %67, %69 : vector<1x16x128xf32>
    %c0_59 = arith.constant 0 : index
    %c2_60 = arith.constant 2 : index
    %c0_61 = arith.constant 0 : index
    %c0_62 = arith.constant 0 : index
    %71 = vector.load %arg10[%c0_59, %c2_60, %c0_61, %c0_62] : memref<1x8x16x128xf32, #tpu.memory_space<vmem>>, vector<1x1x16x128xf32>
    %72 = vector.shape_cast %71 : vector<1x1x16x128xf32> to vector<1x16x128xf32>
    %73 = arith.mulf %72, %70 : vector<1x16x128xf32>
    %cst_63 = arith.constant dense<0.000000e+00> : vector<1x128xf32>
    %74 = vector.multi_reduction <add>, %73, %cst_63 [1] : vector<1x16x128xf32> to vector<1x128xf32>
    %c0_64 = arith.constant 0 : index
    %c2_65 = arith.constant 2 : index
    %c0_66 = arith.constant 0 : index
    %75 = vector.load %arg11[%c0_64, %c2_65, %c0_66] : memref<1x8x128xf32, #tpu.memory_space<vmem>>, vector<1x1x128xf32>
    %76 = vector.shape_cast %75 : vector<1x1x128xf32> to vector<1x128xf32>
    %77 = vector.shape_cast %74 : vector<1x128xf32> to vector<1x1x128xf32>
    tpu.vector_store %arg11[%c0_64, %c2_65, %c0_66], %77 {strides = array<i32>} : memref<1x8x128xf32, #tpu.memory_space<vmem>>, vector<1x1x128xf32>,
    %c0_67 = arith.constant 0 : index
    %c3 = arith.constant 3 : index
    %c0_68 = arith.constant 0 : index
    %c0_69 = arith.constant 0 : index
    %78 = vector.load %arg9[%c0_67, %c3, %c0_68, %c0_69] : memref<1x8x16x128xf32, #tpu.memory_space<vmem>>, vector<1x1x16x128xf32>
    %79 = vector.shape_cast %78 : vector<1x1x16x128xf32> to vector<1x16x128xf32>
    %80 = arith.mulf %70, %79 : vector<1x16x128xf32>
    %c0_70 = arith.constant 0 : index
    %c3_71 = arith.constant 3 : index
    %c0_72 = arith.constant 0 : index
    %c0_73 = arith.constant 0 : index
    %81 = vector.load %arg8[%c0_70, %c3_71, %c0_72, %c0_73] : memref<1x8x16x128xf32, #tpu.memory_space<vmem>>, vector<1x1x16x128xf32>
    %82 = vector.shape_cast %81 : vector<1x1x16x128xf32> to vector<1x16x128xf32>
    %83 = arith.addf %80, %82 : vector<1x16x128xf32>
    %c0_74 = arith.constant 0 : index
    %c3_75 = arith.constant 3 : index
    %c0_76 = arith.constant 0 : index
    %c0_77 = arith.constant 0 : index
    %84 = vector.load %arg10[%c0_74, %c3_75, %c0_76, %c0_77] : memref<1x8x16x128xf32, #tpu.memory_space<vmem>>, vector<1x1x16x128xf32>
    %85 = vector.shape_cast %84 : vector<1x1x16x128xf32> to vector<1x16x128xf32>
    %86 = arith.mulf %85, %83 : vector<1x16x128xf32>
    %cst_78 = arith.constant dense<0.000000e+00> : vector<1x128xf32>
    %87 = vector.multi_reduction <add>, %86, %cst_78 [1] : vector<1x16x128xf32> to vector<1x128xf32>
    %c0_79 = arith.constant 0 : index
    %c3_80 = arith.constant 3 : index
    %c0_81 = arith.constant 0 : index
    %88 = vector.load %arg11[%c0_79, %c3_80, %c0_81] : memref<1x8x128xf32, #tpu.memory_space<vmem>>, vector<1x1x128xf32>
    %89 = vector.shape_cast %88 : vector<1x1x128xf32> to vector<1x128xf32>
    %90 = vector.shape_cast %87 : vector<1x128xf32> to vector<1x1x128xf32>
    tpu.vector_store %arg11[%c0_79, %c3_80, %c0_81], %90 {strides = array<i32>} : memref<1x8x128xf32, #tpu.memory_space<vmem>>, vector<1x1x128xf32>,
    %c0_82 = arith.constant 0 : index
    %c4 = arith.constant 4 : index
    %c0_83 = arith.constant 0 : index
    %c0_84 = arith.constant 0 : index
    %91 = vector.load %arg9[%c0_82, %c4, %c0_83, %c0_84] : memref<1x8x16x128xf32, #tpu.memory_space<vmem>>, vector<1x1x16x128xf32>
    %92 = vector.shape_cast %91 : vector<1x1x16x128xf32> to vector<1x16x128xf32>
    %93 = arith.mulf %83, %92 : vector<1x16x128xf32>
    %c0_85 = arith.constant 0 : index
    %c4_86 = arith.constant 4 : index
    %c0_87 = arith.constant 0 : index
    %c0_88 = arith.constant 0 : index
    %94 = vector.load %arg8[%c0_85, %c4_86, %c0_87, %c0_88] : memref<1x8x16x128xf32, #tpu.memory_space<vmem>>, vector<1x1x16x128xf32>
    %95 = vector.shape_cast %94 : vector<1x1x16x128xf32> to vector<1x16x128xf32>
    %96 = arith.addf %93, %95 : vector<1x16x128xf32>
    %c0_89 = arith.constant 0 : index
    %c4_90 = arith.constant 4 : index
    %c0_91 = arith.constant 0 : index
    %c0_92 = arith.constant 0 : index
    %97 = vector.load %arg10[%c0_89, %c4_90, %c0_91, %c0_92] : memref<1x8x16x128xf32, #tpu.memory_space<vmem>>, vector<1x1x16x128xf32>
    %98 = vector.shape_cast %97 : vector<1x1x16x128xf32> to vector<1x16x128xf32>
    %99 = arith.mulf %98, %96 : vector<1x16x128xf32>
    %cst_93 = arith.constant dense<0.000000e+00> : vector<1x128xf32>
    %100 = vector.multi_reduction <add>, %99, %cst_93 [1] : vector<1x16x128xf32> to vector<1x128xf32>
    %c0_94 = arith.constant 0 : index
    %c4_95 = arith.constant 4 : index
    %c0_96 = arith.constant 0 : index
    %101 = vector.load %arg11[%c0_94, %c4_95, %c0_96] : memref<1x8x128xf32, #tpu.memory_space<vmem>>, vector<1x1x128xf32>
    %102 = vector.shape_cast %101 : vector<1x1x128xf32> to vector<1x128xf32>
    %103 = vector.shape_cast %100 : vector<1x128xf32> to vector<1x1x128xf32>
    tpu.vector_store %arg11[%c0_94, %c4_95, %c0_96], %103 {strides = array<i32>} : memref<1x8x128xf32, #tpu.memory_space<vmem>>, vector<1x1x128xf32>,
    %c0_97 = arith.constant 0 : index
    %c5 = arith.constant 5 : index
    %c0_98 = arith.constant 0 : index
    %c0_99 = arith.constant 0 : index
    %104 = vector.load %arg9[%c0_97, %c5, %c0_98, %c0_99] : memref<1x8x16x128xf32, #tpu.memory_space<vmem>>, vector<1x1x16x128xf32>
    %105 = vector.shape_cast %104 : vector<1x1x16x128xf32> to vector<1x16x128xf32>
    %106 = arith.mulf %96, %105 : vector<1x16x128xf32>
    %c0_100 = arith.constant 0 : index
    %c5_101 = arith.constant 5 : index
    %c0_102 = arith.constant 0 : index
    %c0_103 = arith.constant 0 : index
    %107 = vector.load %arg8[%c0_100, %c5_101, %c0_102, %c0_103] : memref<1x8x16x128xf32, #tpu.memory_space<vmem>>, vector<1x1x16x128xf32>
    %108 = vector.shape_cast %107 : vector<1x1x16x128xf32> to vector<1x16x128xf32>
    %109 = arith.addf %106, %108 : vector<1x16x128xf32>
    %c0_104 = arith.constant 0 : index
    %c5_105 = arith.constant 5 : index
    %c0_106 = arith.constant 0 : index
    %c0_107 = arith.constant 0 : index
    %110 = vector.load %arg10[%c0_104, %c5_105, %c0_106, %c0_107] : memref<1x8x16x128xf32, #tpu.memory_space<vmem>>, vector<1x1x16x128xf32>
    %111 = vector.shape_cast %110 : vector<1x1x16x128xf32> to vector<1x16x128xf32>
    %112 = arith.mulf %111, %109 : vector<1x16x128xf32>
    %cst_108 = arith.constant dense<0.000000e+00> : vector<1x128xf32>
    %113 = vector.multi_reduction <add>, %112, %cst_108 [1] : vector<1x16x128xf32> to vector<1x128xf32>
    %c0_109 = arith.constant 0 : index
    %c5_110 = arith.constant 5 : index
    %c0_111 = arith.constant 0 : index
    %114 = vector.load %arg11[%c0_109, %c5_110, %c0_111] : memref<1x8x128xf32, #tpu.memory_space<vmem>>, vector<1x1x128xf32>
    %115 = vector.shape_cast %114 : vector<1x1x128xf32> to vector<1x128xf32>
    %116 = vector.shape_cast %113 : vector<1x128xf32> to vector<1x1x128xf32>
    tpu.vector_store %arg11[%c0_109, %c5_110, %c0_111], %116 {strides = array<i32>} : memref<1x8x128xf32, #tpu.memory_space<vmem>>, vector<1x1x128xf32>,
    %c0_112 = arith.constant 0 : index
    %c6 = arith.constant 6 : index
    %c0_113 = arith.constant 0 : index
    %c0_114 = arith.constant 0 : index
    %117 = vector.load %arg9[%c0_112, %c6, %c0_113, %c0_114] : memref<1x8x16x128xf32, #tpu.memory_space<vmem>>, vector<1x1x16x128xf32>
    %118 = vector.shape_cast %117 : vector<1x1x16x128xf32> to vector<1x16x128xf32>
    %119 = arith.mulf %109, %118 : vector<1x16x128xf32>
    %c0_115 = arith.constant 0 : index
    %c6_116 = arith.constant 6 : index
    %c0_117 = arith.constant 0 : index
    %c0_118 = arith.constant 0 : index
    %120 = vector.load %arg8[%c0_115, %c6_116, %c0_117, %c0_118] : memref<1x8x16x128xf32, #tpu.memory_space<vmem>>, vector<1x1x16x128xf32>
    %121 = vector.shape_cast %120 : vector<1x1x16x128xf32> to vector<1x16x128xf32>
    %122 = arith.addf %119, %121 : vector<1x16x128xf32>
    %c0_119 = arith.constant 0 : index
    %c6_120 = arith.constant 6 : index
    %c0_121 = arith.constant 0 : index
    %c0_122 = arith.constant 0 : index
    %123 = vector.load %arg10[%c0_119, %c6_120, %c0_121, %c0_122] : memref<1x8x16x128xf32, #tpu.memory_space<vmem>>, vector<1x1x16x128xf32>
    %124 = vector.shape_cast %123 : vector<1x1x16x128xf32> to vector<1x16x128xf32>
    %125 = arith.mulf %124, %122 : vector<1x16x128xf32>
    %cst_123 = arith.constant dense<0.000000e+00> : vector<1x128xf32>
    %126 = vector.multi_reduction <add>, %125, %cst_123 [1] : vector<1x16x128xf32> to vector<1x128xf32>
    %c0_124 = arith.constant 0 : index
    %c6_125 = arith.constant 6 : index
    %c0_126 = arith.constant 0 : index
    %127 = vector.load %arg11[%c0_124, %c6_125, %c0_126] : memref<1x8x128xf32, #tpu.memory_space<vmem>>, vector<1x1x128xf32>
    %128 = vector.shape_cast %127 : vector<1x1x128xf32> to vector<1x128xf32>
    %129 = vector.shape_cast %126 : vector<1x128xf32> to vector<1x1x128xf32>
    tpu.vector_store %arg11[%c0_124, %c6_125, %c0_126], %129 {strides = array<i32>} : memref<1x8x128xf32, #tpu.memory_space<vmem>>, vector<1x1x128xf32>,
    %c0_127 = arith.constant 0 : index
    %c7 = arith.constant 7 : index
    %c0_128 = arith.constant 0 : index
    %c0_129 = arith.constant 0 : index
    %130 = vector.load %arg9[%c0_127, %c7, %c0_128, %c0_129] : memref<1x8x16x128xf32, #tpu.memory_space<vmem>>, vector<1x1x16x128xf32>
    %131 = vector.shape_cast %130 : vector<1x1x16x128xf32> to vector<1x16x128xf32>
    %132 = arith.mulf %122, %131 : vector<1x16x128xf32>
    %c0_130 = arith.constant 0 : index
    %c7_131 = arith.constant 7 : index
    %c0_132 = arith.constant 0 : index
    %c0_133 = arith.constant 0 : index
    %133 = vector.load %arg8[%c0_130, %c7_131, %c0_132, %c0_133] : memref<1x8x16x128xf32, #tpu.memory_space<vmem>>, vector<1x1x16x128xf32>
    %134 = vector.shape_cast %133 : vector<1x1x16x128xf32> to vector<1x16x128xf32>
    %135 = arith.addf %132, %134 : vector<1x16x128xf32>
    %c0_134 = arith.constant 0 : index
    %c7_135 = arith.constant 7 : index
    %c0_136 = arith.constant 0 : index
    %c0_137 = arith.constant 0 : index
    %136 = vector.load %arg10[%c0_134, %c7_135, %c0_136, %c0_137] : memref<1x8x16x128xf32, #tpu.memory_space<vmem>>, vector<1x1x16x128xf32>
    %137 = vector.shape_cast %136 : vector<1x1x16x128xf32> to vector<1x16x128xf32>
    %138 = arith.mulf %137, %135 : vector<1x16x128xf32>
    %cst_138 = arith.constant dense<0.000000e+00> : vector<1x128xf32>
    %139 = vector.multi_reduction <add>, %138, %cst_138 [1] : vector<1x16x128xf32> to vector<1x128xf32>
    %c0_139 = arith.constant 0 : index
    %c7_140 = arith.constant 7 : index
    %c0_141 = arith.constant 0 : index
    %140 = vector.load %arg11[%c0_139, %c7_140, %c0_141] : memref<1x8x128xf32, #tpu.memory_space<vmem>>, vector<1x1x128xf32>
    %141 = vector.shape_cast %140 : vector<1x1x128xf32> to vector<1x128xf32>
    %142 = vector.shape_cast %139 : vector<1x128xf32> to vector<1x1x128xf32>
    tpu.vector_store %arg11[%c0_139, %c7_140, %c0_141], %142 {strides = array<i32>} : memref<1x8x128xf32, #tpu.memory_space<vmem>>, vector<1x1x128xf32>,
    %c0_142 = arith.constant 0 : index
    %c0_143 = arith.constant 0 : index
    %c0_144 = arith.constant 0 : index
    %143 = vector.load %arg11[%c0_142, %c0_143, %c0_144] : memref<1x8x128xf32, #tpu.memory_space<vmem>>, vector<1x8x128xf32>
    %144 = vector.shape_cast %143 : vector<1x8x128xf32> to vector<8x128xf32>
    %c0_145 = arith.constant 0 : index
    %c0_146 = arith.constant 0 : index
    %145 = vector.load %arg4[%c0_145, %c0_146] : memref<128x128xf32, #tpu.memory_space<vmem>>, vector<128x128xf32>
    %cst_147 = arith.constant dense<0.000000e+00> : vector<8x128xf32>
    %146 = tpu.matmul %144, %145, %cst_147 {dimension_numbers = #tpu.dot_dimension_numbers<[1], [0], [0], [1], [0, 0, 1, 1], [], []>} : vector<8x128xf32>, vector<128x128xf32>, vector<8x128xf32> -> vector<8x128xf32>
    %c0_148 = arith.constant 0 : index
    %c0_149 = arith.constant 0 : index
    %147 = vector.load %arg5[%c0_148, %c0_149] : memref<1x128xf32, #tpu.memory_space<vmem>>, vector<1x128xf32>
    %148 = vector.broadcast %147 : vector<1x128xf32> to vector<8x128xf32>
    %149 = arith.addf %146, %148 : vector<8x128xf32>
    %150 = vector.shape_cast %149 : vector<8x128xf32> to vector<1x8x128xf32>
    %c0_150 = arith.constant 0 : index
    %c0_151 = arith.constant 0 : index
    %c0_152 = arith.constant 0 : index
    %151 = vector.load %arg6[%c0_150, %c0_151, %c0_152] : memref<1x8x128xf32, #tpu.memory_space<vmem>>, vector<1x8x128xf32>
    tpu.vector_store %arg6[%c0_150, %c0_151, %c0_152], %150 {strides = array<i32>} : memref<1x8x128xf32, #tpu.memory_space<vmem>>, vector<1x8x128xf32>,
    %152 = vector.extract_strided_slice %135 {offsets = [0, 0, 0], sizes = [1, 16, 32], strides = [1, 1, 1]} : vector<1x16x128xf32> to vector<1x16x32xf32>
    %c0_153 = arith.constant 0 : index
    %c0_154 = arith.constant 0 : index
    %c0_155 = arith.constant 0 : index
    %153 = vector.load %arg7[%c0_153, %c0_154, %c0_155] : memref<1x16x32xf32, #tpu.memory_space<vmem>>, vector<1x16x32xf32>
    tpu.vector_store %arg7[%c0_153, %c0_154, %c0_155], %152 {strides = array<i32>} : memref<1x16x32xf32, #tpu.memory_space<vmem>>, vector<1x16x32xf32>,
    return
  }
  func.func @transform_0(%arg0: i32) -> (i32, i32, i32) {
    %c0_i32 = arith.constant 0 : i32
    %c0_i32_0 = arith.constant 0 : i32
    %c0_i32_1 = arith.constant 0 : i32
    return %arg0, %c0_i32, %c0_i32_0 : i32, i32, i32
  }
  func.func @transform_1(%arg0: i32) -> (i32, i32) {
    %c0_i32 = arith.constant 0 : i32
    %c0_i32_0 = arith.constant 0 : i32
    %c0_i32_1 = arith.constant 0 : i32
    return %c0_i32, %c0_i32_0 : i32, i32
  }
  func.func @transform_2(%arg0: i32) -> (i32, i32) {
    %c0_i32 = arith.constant 0 : i32
    %c0_i32_0 = arith.constant 0 : i32
    %c0_i32_1 = arith.constant 0 : i32
    return %c0_i32, %c0_i32_0 : i32, i32
  }
  func.func @transform_3(%arg0: i32) -> (i32, i32) {
    %c0_i32 = arith.constant 0 : i32
    %c0_i32_0 = arith.constant 0 : i32
    %c0_i32_1 = arith.constant 0 : i32
    return %c0_i32, %c0_i32_0 : i32, i32
  }
  func.func @transform_4(%arg0: i32) -> (i32, i32) {
    %c0_i32 = arith.constant 0 : i32
    %c0_i32_0 = arith.constant 0 : i32
    %c0_i32_1 = arith.constant 0 : i32
    return %c0_i32, %c0_i32_0 : i32, i32
  }
  func.func @transform_5(%arg0: i32) -> (i32, i32, i32) {
    %c0_i32 = arith.constant 0 : i32
    %c0_i32_0 = arith.constant 0 : i32
    %c0_i32_1 = arith.constant 0 : i32
    return %arg0, %c0_i32, %c0_i32_0 : i32, i32, i32
  }
  func.func @transform_6(%arg0: i32) -> (i32, i32, i32) {
    %c0_i32 = arith.constant 0 : i32
    %c0_i32_0 = arith.constant 0 : i32
    %c0_i32_1 = arith.constant 0 : i32
    return %arg0, %c0_i32, %c0_i32_0 : i32, i32, i32
  }
}

</mosaic_0001>

<bundles_post_ra>
// kernel: tpu_custom_call.1
= control target key start
LH: loop header
LB: loop body
LE: loop exit
PB: predicated region body
PF: predicated region fallthrough
CT: control target
= control target key end

     0   :  { %s2068_s0 = inlined_call_operand.hbm [shape: f32[2,8,32], index: 0, kind: input, shape index: {}]   ;;  %s2069_s1 = inlined_call_operand.hbm [shape: f32[32,512], index: 1, kind: input, shape index: {}]   ;;  %s2070_s2 = inlined_call_operand.hbm [shape: f32[1,512], index: 2, kind: input, shape index: {}]   ;;  %s2071_s3 = inlined_call_operand.hbm [shape: f32[128,128], index: 3, kind: input, shape index: {}]   ;;  %s2072_s4 = inlined_call_operand.vmem [shape: f32[1,128], index: 4, kind: input, shape index: {}]   ;;  %s2073_s5 = inlined_call_operand.hbm [shape: f32[2,8,128], index: 5, kind: output, shape index: {0}]   ;;  %s2074_s6 = inlined_call_operand.hbm [shape: f32[2,16,32], index: 6, kind: output, shape index: {1}]  }
   0x1   :  { %2076 = sst [smem:[#allocation22_spill]] %s2068_s0 }
   0x2   :  { %12 = vsyncpa [#allocation7], 0 }
   0x3   :  { %14 = vsyncpa [#allocation7 + $0x1], 0 }
   0x4   :  { %15 = vsyncpa [#allocation10], 0 }
   0x5   :  { %16 = vsyncpa [#allocation13], 0 }
   0x6   :  { %17 = vsyncpa [#allocation8], 0 }
   0x7   :  { %19 = vsyncpa [#allocation8 + $0x1], 0 }
   0x8   :  { %20 = vsyncpa [#allocation16], 0 }
   0x9   :  { %22 = vsyncpa [#allocation16 + $0x1], 0  ;;  %s1712_s21 = smov 0   ;;  %s1714_s22 = smov 0  }
   0xa   :  { %s1716_s23 = smov 0   ;;  %s1718_s24 = smov 0  }
   0xb LB: > { %s206_s27 = sshll.u32 %s2069_s1, 4  ;;  %s1736_s28 = sadd.s32 4294967295, %s1666_s24   ;;  %s1666_s24 = sphi %s1718_s24, %s2089_s24   ;;  %s1662_s23 = sphi %s1716_s23, %s2088_s23   ;;  %s1658_s22 = sphi %s1714_s22, %s2087_s22   ;;  %s1654_s21 = sphi %s1712_s21, %s2086_s21   ;;  %s207_s27 = int_to_ptr.hbm [resolvable:$true] %s206_s27 }
   0xc   : > { %p1273_p0 = scmp.ge.s32.totalorder %s1666_s24, 1  ;;  %p49_p1 = scmp.eq.s32.totalorder %s1736_s28, 0 }
   0xd   : > { %p195_p2 = scmp.lt.s32.totalorder %s1666_s24, 3  ;;  %s1668_s30 = smov [#allocation9]  }
   0xe   : > { %s208_s7 = sshll.u32 %s1668_s30, 4  ;;  %s221_s10 = sshll.u32 %s2070_s2, 4  ;;  %s209_s7 = int_to_ptr.vmem [resolvable:$true] %s208_s7  ;;  %s222_s10 = int_to_ptr.hbm [resolvable:$true] %s221_s10 }
   0xf   : > { %p1741_p3 = pnand %p1273_p0, %p195_p2  ;;  %s232_s14 = sshll.u32 %s2071_s3, 4  ;;  %s233_s14 = int_to_ptr.hbm [resolvable:$true] %s232_s14 }
  0x10   : > { %s1669_s15 = smov [#allocation11]   ;;  %s1670_s17 = smov 512  }
  0x11   : > { %p1319_p4 = pneg %p1741_p3  ;;  %s223_s16 = sshll.u32 %s1669_s15, 4  ;;  %s224_s16 = int_to_ptr.vmem [resolvable:$true] %s223_s16 }
  0x12   : > { %s1671_s18 = smov 32   ;;  %s1672_s19 = smov [#allocation12]  }
  0x13   : > { %p1753_p6 = pnand %p1319_p4, %p49_p1  ;;  %s234_s20 = sshll.u32 %s1672_s19, 4  ;;  %s235_s20 = int_to_ptr.vmem [resolvable:$true] %s234_s20 }
  0x14   : > { %s1673_s25 = smov 128   ;;  %s1674_s26 = smov 8  }
  0x15   : > { %1322 = dma.hbm_to_vmem [thread:$0]  (!%p1753_p6), %s207_s27, 2048, %s209_s7, [#allocation10], %s1670_s17, %s1670_s17, %s1671_s18  }
  0x16   : > { %1325 = dma.hbm_to_vmem [thread:$0]  (!%p1753_p6), %s222_s10, 64, %s224_s16, [#allocation10]  }
  0x17   : > { %1328 = dma.hbm_to_vmem [thread:$0]  (!%p1753_p6), %s233_s14, 2048, %s235_s20, [#allocation13], %s1673_s25, %s1673_s25, %s1674_s26  }
  0x18   : > { %s1272_s30 = sadd.s32 4294967294, %s1666_s24   ;;  %s1768_s27 = sadd.s32 1, %s1666_s24  }
  0x19   : > { %s35_s7 = sadd.s32 1, %s1662_s23  ;;  %s32_s8 = ssub.s32 %s1666_s24, %s1768_s27 }
  0x1a   : > { %p42_p7 = scmp.ne.s32.totalorder %s1662_s23, %s1658_s22  ;;  %p33_p8 = scmp.eq.s32.totalorder %s32_s8, 0 }
  0x1b   : > { %p43_p9 = scmp.eq.s32.totalorder %s1666_s24, 0  ;;  %p48_p10 = scmp.ne.s32.totalorder %s1658_s22, %s1654_s21 }
  0x1c   : > { %p156_p11 = scmp.eq.s32.totalorder %s1736_s28, 1  ;;  %p162_p0 = scmp.eq.s32.totalorder %s1272_s30, 1 }
  0x1d   : > { %s1780_s9 = scalar_select %p33_p8, %s1662_s23, %s35_s7  }
  0x1e   : > { %p1784_p12 = por %p49_p1, %p48_p10  ;;  %p1788_p13 = por %p156_p11, %p42_p7 }
  0x1f   : > { %p44_p2 = por %p43_p9, %p42_p7  ;;  %s251_s12 = sand.u32 1, %s1662_s23  }
  0x20   : > { %p1793_p4 = por %p162_p0, %p48_p10  ;;  %p1343_p6 = scmp.lt.s32.totalorder %s1666_s24, 2 }
  0x21   : > { %s1278_s14 = sshll.u32 %s251_s12, 3  ;;  %s1279_s15 = sshll.u32 %s1666_s24, 3 }
  0x22   : > { %s2082_s0 = sld [smem:[#allocation22_spill]]  ;;  %s255_s20 = scalar_lea.vmem [#allocation6], %s1278_s14 }
  0x23   : > { %s263_s25 = sshll.u32 %s255_s20, 4  ;;  %p1802_p8 = pnand %p1343_p6, %p44_p2  ;;  %s264_s25 = int_to_ptr.vmem [resolvable:$true] %s263_s25 }
  0x24   : > { %s252_s30 = scalar_lea.sflag [#allocation7], %s251_s12 }
  0x25   : > { %p1534_p9 = pneg %p1802_p8 }
  0x28   : > { %s259_s18 = scalar_lea.hbm %s2082_s0, %s1279_s15  ;;  %s1537_s14 = scalar_lea.hbm %s2082_s0, 16 }
  0x29   : > { %s261_s19 = sshll.u32 %s259_s18, 4  ;;  %s262_s19 = int_to_ptr.hbm [resolvable:$true] %s261_s19 }
  0x2a   : > { %s1530_s7 = sshra.s32 %s262_s19, 4  ;;  %s1531_s7 = int_to_ptr.hbm [resolvable:$true] %s1530_s7 }
  0x2b   : > { %s1532_s8 = scalar_lea.hbm %s1531_s7, 8  ;;  %p1538_p0 = scmp.lt.s32.totalorder %s1531_s7, %s2082_s0 }
  0x2c   : > { %p1533_p7 = scmp.ne.s32.totalorder %s1531_s7, %s1532_s8  ;;  %p1539_p2 = scmp.lt.s32.totalorder %s1537_s14, %s1532_s8 }
  0x2e   : > { %p1535_p10 = pnand %p1534_p9, %p1533_p7  ;;  %p1540_p6 = por %p1539_p2, %p1538_p0 }
  0x30   : > { %p1536_p11 = pneg %p1535_p10 }
  0x32   : > { %p1541_p5 = pnand %p1540_p6, %p1536_p11 }
  0x34   : > { %1544 = shalt.err (!%p1541_p5)
}
  0x35   : > { %1332 = dma.hbm_to_vmem [thread:$0]  (!%p1802_p8), %s262_s19, 128, %s264_s25, %s252_s30  }
  0x36   : > { %272 = sbr.rel (%p1741_p3) target bundleno = 752 (0x2f0), region = 40  ;;  %s1819_s12 = sand.u32 (!%p1741_p3), 1, %s1658_s22  }
  0x37   : > { %s2075_s20 = sshll.u32 (!%p1741_p3), %s1819_s12, 3  ;;  %s275_s15 = scalar_lea.sflag (!%p1741_p3), [#allocation7], %s1819_s12 }
  0x38   : > { %s278_s7 = scalar_lea.vmem (!%p1741_p3), [#allocation6], %s2075_s20 }
  0x3b   : > { %1633 = dma.done.wait (%p1784_p12), %s275_s15, 128  }
  0x3c   : > { %1635 = vsyncadd (%p1784_p12), %s275_s15, 4294967168 }
  0x3d   : > { %1637 = dma.done.wait (%p49_p1), [#allocation10], 2112  }
  0x3e   : > { %1639 = vsyncadd (%p49_p1), [#allocation10], 4294965184 }
  0x3f   : > { %1641 = dma.done.wait (%p49_p1), [#allocation13], 2048  }
  0x40   : > { %1643 = vsyncadd (%p49_p1), [#allocation13], 4294965248  ;;  %v478_v0 = vlaneseq  ;;  %v341_v2 = vld [vmem:[#allocation9 + $0x60] sm:$0xff]  ;;  %v343_v4 = vld [vmem:[#allocation9 + $0x70] sm:$0xff]  ;;  %vm355_vm0 = vcmask 261120   ;;  %s1286_s29 = sshll.u32 %s1819_s12, 4 }
  0x41   : > { %v337_v3 = vld [vmem:[#allocation9 + $0x40] sm:$0xff]  ;;  %371 = vmatpush.msra.mxu1 %v341_v2  ;;  %411 = vmatpush.msra.mxu2 %v343_v4  ;;  %v339_v6 = vld [vmem:[#allocation9 + $0x50] sm:$0xff]  ;;  %v342_v11 = vld [vmem:[#allocation9 + $0x68] sm:$0xff]  ;;  %s2007_s10 = scalar_lea.vmem [#allocation15], %s1286_s29  ;;  %s1300_s19 = sshll.u32 %s1736_s28, 4 }
  0x42   : > { %v1837_v1 = vshrl.u32 %v478_v0, 7  ;;  %v333_v5 = vld [vmem:[#allocation9 + $0x20] sm:$0xff]  ;;  %v335_v7 = vld [vmem:[#allocation9 + $0x30] sm:$0xff]  ;;  %v338_v12 = vld [vmem:[#allocation9 + $0x48] sm:$0xff]  ;;  %s1133_s30 = scalar_lea.hbm %s2074_s6, %s1300_s19  ;;  %s1134_s8 = sshll.u32 %s2007_s10, 4  ;;  %s1135_s8 = int_to_ptr.vmem [resolvable:$true] %s1134_s8 }
  0x43   : > { %372 = vmatpush.msra.mxu1 %v337_v3  ;;  %v329_v8 = vld [vmem:[#allocation9] sm:$0xff]  ;;  %412 = vmatpush.msra.mxu2 %v339_v6  ;;  %v1842_v9 = vld [vmem:[%s278_s7] sm:$0xff]  ;;  %v334_v13 = vld [vmem:[#allocation9 + $0x28] sm:$0xff]  ;;  %s1136_s16 = sshll.u32 %s1133_s30, 4  ;;  %s1108_s14 = scalar_lea.sflag [#allocation16], %s1819_s12  ;;  %s1137_s16 = int_to_ptr.hbm [resolvable:$true] %s1136_s16 }
  0x44   : > { %1393 = vset.pattern.permute.xlu2 %v1837_v1  ;;  %1391 = vset.pattern.permute.xlu1 %v1837_v1  ;;  %v331_v10 = vld [vmem:[#allocation9 + $0x10] sm:$0xff]  ;;  %v330_v14 = vld [vmem:[#allocation9 + $0x8] sm:$0xff]  ;;  %v1850_v15 = vld [vmem:[#allocation11] sm:$0xf]  ;;  %v1860_v25 = vadd.s32 8, %v1837_v1  ;;  %s1574_s17 = sshra.s32 %s1137_s16, 4  ;;  %s1575_s17 = int_to_ptr.hbm [resolvable:$true] %s1574_s17 }
  0x45   : > { %1389 = vset.pattern.permute.xlu0 %v1837_v1  ;;  %373 = vmatpush.msra.mxu1 %v333_v5  ;;  %v347_v16 = vperm.slane %v1850_v15, 0  ;;  %v349_v22 = vperm.slane %v1850_v15, 2  ;;  %v348_v42 = vperm.slane %v1850_v15, 1  ;;  %v344_v48 = vld [vmem:[#allocation9 + $0x78] sm:$0xff]  ;;  %s1576_s18 = scalar_lea.hbm %s1575_s17, 16  ;;  %s1580_s29 = scalar_lea.hbm %s2074_s6, 32 }
  0x46   : > { %413 = vmatpush.msra.mxu2 %v335_v7  ;;  %v340_v49 = vld [vmem:[#allocation9 + $0x58] sm:$0xff]  ;;  %431 = vmatpush.msra.mxu3 %v344_v48  ;;  %p1577_p1 = scmp.ne.s32.totalorder %s1575_s17, %s1576_s18  ;;  %p1581_p12 = scmp.lt.s32.totalorder %s1575_s17, %s2074_s6 }
  0x47   : > { %374 = vmatpush.msra.mxu1 %v329_v8  ;;  %v336_v50 = vld [vmem:[#allocation9 + $0x38] sm:$0xff]  ;;  %p1582_p8 = scmp.lt.s32.totalorder %s1580_s29, %s1576_s18 }
  0x48   : > { %1287 = vmatmul.msk.f32.vlgmr.msra.gmra.mxu1 %vm355_vm0, %v1842_v9  ;;  %414 = vmatpush.msra.mxu2 %v331_v10  ;;  %v332_v52 = vld [vmem:[#allocation9 + $0x18] sm:$0xff]  ;;  %p1578_p3 = pnand %p1577_p1, %p1788_p13 }
  0x49   : > { %1289 = vmatmul.msk.f32.vlgmr.msra.gmra.mxu2 %vm355_vm0, %v1842_v9  ;;  %391 = vmatpush.msrb.mxu1 %v342_v11  ;;  %p1583_p7 = por %p1582_p8, %p1581_p12 }
  0x4a   : > { %432 = vmatpush.msra.mxu3 %v340_v49  ;;  %p1579_p5 = pneg %p1578_p3 }
  0x4b   : > { %392 = vmatpush.msrb.mxu1 %v338_v12 }
  0x4c   : > { %433 = vmatpush.msra.mxu3 %v336_v50  ;;  %p1584_p9 = pnand %p1583_p7, %p1579_p5 }
  0x4d   : > { %393 = vmatpush.msrb.mxu1 %v334_v13 }
  0x4e   : > { %434 = vmatpush.msra.mxu3 %v332_v52 }
  0x4f   : > { %394 = vmatpush.msrb.mxu1 %v330_v14  ;;  %1290 = vmatmul.msk.f32.vlgmr.msra.gmra.mxu3 %vm355_vm0, %v1842_v9 }
  0x50   : > { %1288 = vmatmul.msk.f32.vlgmr.msrb.gmra.mxu1 %vm355_vm0, %v1842_v9 }
  0xc5   : > { %v376_v17 = vpop.f32.mrf.mxu1 }
  0xc6   : > { %v1853_v18 = vadd.f32 %v376_v17, %v347_v16 }
  0xc8   : > { %v503_v19 = vperm.slane %v1853_v18, 2  ;;  %v490_v20 = vperm.slane %v1853_v18, 1  ;;  %v477_v21 = vperm.slane %v1853_v18, 0  ;;  %v516_v30 = vperm.slane %v1853_v18, 3 }
  0xc9   : > { %v529_v39 = vperm.slane %v1853_v18, 4  ;;  %v542_v43 = vperm.slane %v1853_v18, 5  ;;  %v555_v56 = vperm.slane %v1853_v18, 6  ;;  %v568_v12 = vperm.slane %v1853_v18, 7 }
  0xca   : > { %508 = vperm.xlu2 %1393, %v503_v19   ;;  %495 = vperm.xlu1 %1391, %v490_v20  }
  0xcb   : > { %482 = vperm.xlu0 %1389, %v477_v21  }
  0xcc   : > { %v416_v23 = vpop.f32.mrf.mxu2 }
  0xcd   : > { %v417_v24 = vadd.f32 %v416_v23, %v349_v22  ;;  %v396_v44 = vpop.f32.mrf.mxu1 }
  0xce   : > { %v397_v45 = vadd.f32 %v396_v44, %v348_v42 }
  0xcf   : > { %v1292_v26 = vmul.f32 -1.442695, %v417_v24 }
  0xd0   : > { %v1291_v47 = vmul.f32 -1.442695, %v397_v45 }
  0xd1   : > { %1432 = vpow2.f32 %v1292_v26 }
  0xd2   : > { %1394 = vset.pattern.permute.xlu2 %v1860_v25  ;;  %1392 = vset.pattern.permute.xlu1 %v1860_v25  ;;  %v436_v45 = vpop.f32.mrf.mxu3 }
  0xd3   : > { %1390 = vset.pattern.permute.xlu0 %v1860_v25 }
  0xd7   : > { %v1433_v27 = vpop.eup %1432 }
  0xd8   : > { %v461_v28 = vadd.f32 1.0, %v1433_v27 }
  0xda   : > { %1434 = vrcp.f32 %v461_v28  ;;  %514 = vperm.xlu2 %1394, %v503_v19   ;;  %501 = vperm.xlu1 %1392, %v490_v20   ;;  %vm467_vm1 = vweird.f32 %v461_v28  ;;  %v473_v33 = vand.u32 2147483648, %v461_v28  ;;  %v471_v35 = vand.u32 2147483647, %v461_v28 }
  0xdb   : > { %488 = vperm.xlu0 %1390, %v477_v21   ;;  %1436 = vpow2.f32 %v1291_v47 }
  0xdc   : > { %v474_v37 = vor.u32 1.1754944e-38, %v473_v33  ;;  %vm472_vm4 = vcmp.eq.f32.partialorder %v471_v35, 8.507059e+37 }
  0xe0   : > { %v1435_v29 = vpop.eup %1434 }
  0xe1   : > { %v463_v31 = vmul.f32 %v1435_v29, %v461_v28  ;;  %vm468_vm2 = vweird.f32 %v1435_v29  ;;  %v1437_v51 = vpop.eup %1436 }
  0xe2   : > { %527 = vperm.xlu2 %1394, %v516_v30   ;;  %1395 = vset.pattern.permute.xlu1 %v1837_v1  ;;  %vm469_vm3 = vmor %vm467_vm1, %vm468_vm2  ;;  %v442_v53 = vadd.f32 1.0, %v1437_v51 }
  0xe3   : > { %v464_v32 = vsub.f32 1.0, %v463_v31  ;;  %1396 = vset.pattern.permute.xlu0 %v1837_v1 }
  0xe4   : > { %1438 = vrcp.f32 %v442_v53  ;;  %vm448_vm5 = vweird.f32 %v442_v53  ;;  %v454_v62 = vand.u32 2147483648, %v442_v53  ;;  %v452_v0 = vand.u32 2147483647, %v442_v53 }
  0xe5   : > { %v465_v34 = vmul.f32 %v1435_v29, %v464_v32 }
  0xe6   : > { %v455_v2 = vor.u32 1.1754944e-38, %v454_v62  ;;  %vm453_vm8 = vcmp.eq.f32.partialorder %v452_v0, 8.507059e+37 }
  0xe7   : > { %v466_v36 = vadd.f32 %v1435_v29, %v465_v34 }
  0xe9   : > { %v470_v38 = vsel %vm469_vm3, %v1435_v29, %v466_v36 }
  0xea   : > { %1398 = vset.pattern.permute.xlu2 %v1837_v1  ;;  %521 = vperm.xlu1 %1395, %v516_v30   ;;  %v1870_v40 = vsel %vm472_vm4, %v474_v37, %v470_v38  ;;  %v1439_v57 = vpop.eup %1438 }
  0xeb   : > { %534 = vperm.xlu0 %1396, %v529_v39   ;;  %v685_v41 = vperm.slane %v1870_v40, 0  ;;  %v711_v46 = vperm.slane %v1870_v40, 2  ;;  %v698_v54 = vperm.slane %v1870_v40, 1  ;;  %v724_v55 = vperm.slane %v1870_v40, 3 }
  0xec   : > { %v444_v58 = vmul.f32 %v1439_v57, %v442_v53  ;;  %v776_v61 = vperm.slane %v1870_v40, 7  ;;  %vm449_vm6 = vweird.f32 %v1439_v57  ;;  %v737_v6 = vperm.slane %v1870_v40, 4 }
  0xed   : > { %vm450_vm7 = vmor %vm448_vm5, %vm449_vm6  ;;  %v750_v8 = vperm.slane %v1870_v40, 5  ;;  %v763_v10 = vperm.slane %v1870_v40, 6 }
  0xee   : > { %v445_v59 = vsub.f32 1.0, %v444_v58 }
  0xf0   : > { %v446_v60 = vmul.f32 %v1439_v57, %v445_v59 }
  0xf2   : > { %547 = vperm.xlu2 %1398, %v542_v43   ;;  %1397 = vset.pattern.permute.xlu1 %v1860_v25  ;;  %v447_v63 = vadd.f32 %v1439_v57, %v446_v60 }
  0xf3   : > { %690 = vperm.xlu0 %1396, %v685_v41  }
  0xf4   : > { %v451_v3 = vsel %vm450_vm7, %v1439_v57, %v447_v63 }
  0xf5   : > { %v1894_v4 = vsel %vm453_vm8, %v455_v2, %v451_v3 }
  0xf6   : > { %v594_v5 = vperm.slane %v1894_v4, 1  ;;  %v646_v7 = vperm.slane %v1894_v4, 5  ;;  %v659_v9 = vperm.slane %v1894_v4, 6  ;;  %v581_v11 = vperm.slane %v1894_v4, 0 }
  0xf7   : > { %v607_v13 = vperm.slane %v1894_v4, 2  ;;  %v620_v14 = vperm.slane %v1894_v4, 3  ;;  %v633_v16 = vperm.slane %v1894_v4, 4  ;;  %v672_v24 = vperm.slane %v1894_v4, 7 }
  0xfa   : > { %1399 = vset.pattern.permute.xlu2 %v1860_v25  ;;  %540 = vperm.xlu1 %1397, %v529_v39  }
  0xfb   : > { %716 = vperm.xlu0 %1396, %v711_v46  }
 0x102   : > { %553 = vperm.xlu2 %1399, %v542_v43   ;;  %1400 = vset.pattern.permute.xlu1 %v1837_v1 }
 0x103   : > { %1405 = vset.pattern.permute.xlu0 %v1860_v25 }
 0x10a   : > { %709 = vperm.xlu2 %1399, %v698_v54   ;;  %560 = vperm.xlu1 %1400, %v555_v56  }
 0x10b   : > { %735 = vperm.xlu0 %1405, %v724_v55  }
 0x112   : > { %1404 = vset.pattern.permute.xlu2 %v1837_v1  ;;  %1401 = vset.pattern.permute.xlu1 %v1860_v25 }
 0x113   : > { %1412 = vset.pattern.permute.xlu0 %v1837_v1 }
 0x11a   : > { %729 = vperm.xlu2 %1404, %v724_v55   ;;  %696 = vperm.xlu1 %1401, %v685_v41  }
 0x11b   : > { %781 = vperm.xlu0 %1412, %v776_v61  }
 0x122   : > { %1407 = vset.pattern.permute.xlu2 %v1860_v25  ;;  %1402 = vset.pattern.permute.xlu1 %v1837_v1 }
 0x123   : > { %1416 = vset.pattern.permute.xlu0 %v1860_v25 }
 0x124   : > { %v1923_v17 = vpop.permute.xlu2 %508 }
 0x12a   : > { %748 = vperm.xlu2 %1407, %v737_v6   ;;  %703 = vperm.xlu1 %1402, %v698_v54  }
 0x12b   : > { %605 = vperm.xlu0 %1416, %v594_v5  }
 0x132   : > { %1408 = vset.pattern.permute.xlu2 %v1837_v1  ;;  %1403 = vset.pattern.permute.xlu1 %v1860_v25 }
 0x133   : > { %1422 = vset.pattern.permute.xlu0 %v1837_v1 }
 0x134   : > { %v1929_v20 = vpop.permute.xlu2 %514 }
 0x13a   : > { %755 = vperm.xlu2 %1408, %v750_v8   ;;  %722 = vperm.xlu1 %1403, %v711_v46  }
 0x13b   : > { %651 = vperm.xlu0 %1422, %v646_v7  }
 0x13c   : > { %v1927_v19 = vpop.permute.xlu1 %495  ;;  %v1933_v22 = vpop.permute.xlu2 %527 }
 0x13d   : > { %v483_v29 = vpop.permute.xlu0 %482 }
 0x142   : > { %1411 = vset.pattern.permute.xlu2 %v1860_v25  ;;  %1406 = vset.pattern.permute.xlu1 %v1837_v1 }
 0x143   : > { %1425 = vset.pattern.permute.xlu0 %v1860_v25 }
 0x14a   : > { %774 = vperm.xlu2 %1411, %v763_v10   ;;  %742 = vperm.xlu1 %1406, %v737_v6  }
 0x14b   : > { %670 = vperm.xlu0 %1425, %v659_v9  }
 0x14c   : > { %v1931_v21 = vpop.permute.xlu1 %501  ;;  %v1940_v26 = vpop.permute.xlu2 %547 }
 0x14d   : > { %v489_v32 = vpop.permute.xlu0 %488 }
 0x152   : > { %592 = vperm.xlu2 %1411, %v581_v11   ;;  %1409 = vset.pattern.permute.xlu1 %v1860_v25 }
 0x153   : > { %1428 = vset.pattern.permute.xlu0 %v1837_v1 }
 0x15a   : > { %1415 = vset.pattern.permute.xlu2 %v1837_v1  ;;  %761 = vperm.xlu1 %1409, %v750_v8  }
 0x15b   : > { %573 = vperm.xlu0 %1428, %v568_v12  }
 0x15c   : > { %v1937_v23 = vpop.permute.xlu1 %521  ;;  %v1944_v28 = vpop.permute.xlu2 %553 }
 0x15d   : > { %v1954_v35 = vpop.permute.xlu0 %534 }
 0x162   : > { %599 = vperm.xlu2 %1415, %v594_v5   ;;  %1410 = vset.pattern.permute.xlu1 %v1837_v1 }
 0x163   : > { %1430 = vset.pattern.permute.xlu0 %v1860_v25 }
 0x164   : > { %v710_v31 = vpop.permute.xlu2 %709 }
 0x165   : > { %v691_v18 = vpop.permute.xlu0 %690 }
 0x166   : > { %v879_v62 = vmul.f32 0.0, %v691_v18 }
 0x16a   : > { %1417 = vset.pattern.permute.xlu2 %v1860_v25  ;;  %768 = vperm.xlu1 %1410, %v763_v10  }
 0x16c   : > { %v1942_v27 = vpop.permute.xlu1 %540 }
 0x16d   : > { %v717_v41 = vpop.permute.xlu0 %716 }
 0x172   : > { %618 = vperm.xlu2 %1417, %v607_v13   ;;  %1413 = vset.pattern.permute.xlu1 %v1860_v25 }
 0x174   : > { %v1951_v34 = vpop.permute.xlu2 %729 }
 0x17a   : > { %1418 = vset.pattern.permute.xlu2 %v1837_v1  ;;  %787 = vperm.xlu1 %1413, %v776_v61  }
 0x17c   : > { %v1949_v30 = vpop.permute.xlu1 %560 }
 0x17d   : > { %v1968_v44 = vpop.permute.xlu0 %735 }
 0x182   : > { %625 = vperm.xlu2 %1418, %v620_v14   ;;  %1414 = vset.pattern.permute.xlu1 %v1837_v1 }
 0x184   : > { %v1956_v37 = vpop.permute.xlu2 %748 }
 0x18a   : > { %1421 = vset.pattern.permute.xlu2 %v1860_v25  ;;  %586 = vperm.xlu1 %1414, %v581_v11  }
 0x18c   : > { %v697_v33 = vpop.permute.xlu1 %696 }
 0x18d   : > { %v1975_v49 = vpop.permute.xlu0 %781  ;;  %v880_v53 = vmul.f32 0.0, %v697_v33 }
 0x192   : > { %644 = vperm.xlu2 %1421, %v633_v16   ;;  %612 = vperm.xlu1 %1414, %v607_v13  }
 0x194   : > { %v1958_v39 = vpop.permute.xlu2 %755 }
 0x19a   : > { %1424 = vset.pattern.permute.xlu2 %v1837_v1  ;;  %1419 = vset.pattern.permute.xlu1 %v1860_v25 }
 0x19c   : > { %v704_v36 = vpop.permute.xlu1 %703 }
 0x1a2   : > { %664 = vperm.xlu2 %1424, %v659_v9   ;;  %631 = vperm.xlu1 %1419, %v620_v14  }
 0x1a4   : > { %v1963_v42 = vpop.permute.xlu2 %774 }
 0x1aa   : > { %1427 = vset.pattern.permute.xlu2 %v1860_v25  ;;  %1420 = vset.pattern.permute.xlu1 %v1837_v1 }
 0x1ac   : > { %v723_v38 = vpop.permute.xlu1 %722  ;;  %v593_v47 = vpop.permute.xlu2 %592 }
 0x1b2   : > { %683 = vperm.xlu2 %1427, %v672_v24   ;;  %638 = vperm.xlu1 %1420, %v633_v16  }
 0x1ba   : > { %566 = vperm.xlu2 %1427, %v555_v56   ;;  %1423 = vset.pattern.permute.xlu1 %v1860_v25  ;;  %v606_v56 = vpop.permute.xlu0 %605 }
 0x1bc   : > { %v1961_v40 = vpop.permute.xlu1 %742  ;;  %v600_v52 = vpop.permute.xlu2 %599 }
 0x1c2   : > { %657 = vperm.xlu1 %1423, %v646_v7  }
 0x1ca   : > { %1426 = vset.pattern.permute.xlu1 %v1837_v1  ;;  %v350_v1 = vperm.slane %v1850_v15, 3 }
 0x1cc   : > { %v1965_v43 = vpop.permute.xlu1 %761  ;;  %v1970_v46 = vadd.f32 %v436_v45, %v350_v1  ;;  %v619_v63 = vpop.permute.xlu2 %618 }
 0x1ce   : > { %v790_v51 = vrot.slane %v1970_v46, 1  ;;  %v791_v57 = vrot.slane %v1970_v46, 2 }
 0x1d0   : > { %v798_v55 = vperm.slane %v790_v51, 0  ;;  %v799_v60 = vperm.slane %v791_v57, 0 }
 0x1d2   : > { %677 = vperm.xlu1 %1426, %v672_v24   ;;  %v816_v59 = vmul.f32 %v798_v55, %v606_v56  ;;  %v818_v4 = vmul.f32 %v799_v60, %v619_v63  ;;  %v815_v6 = vmul.f32 %v798_v55, %v600_v52 }
 0x1da   : > { %1429 = vset.pattern.permute.xlu1 %v1860_v25  ;;  %v797_v25 = vperm.slane %v1970_v46, 0 }
 0x1dc   : > { %v1972_v48 = vpop.permute.xlu1 %768  ;;  %v814_v50 = vmul.f32 %v797_v25, %v593_v47  ;;  %v626_v56 = vpop.permute.xlu2 %625 }
 0x1de   : > { %v884_v15 = vadd.f32 %v880_v53, %v814_v50 }
 0x1e0   : > { %v901_v58 = vmul.f32 %v884_v15, %v710_v31  ;;  %v888_v5 = vmul.f32 %v884_v15, %v489_v32 }
 0x1e2   : > { %579 = vperm.xlu1 %1429, %v568_v12   ;;  %v906_v2 = vadd.f32 %v901_v58, %v816_v59 }
 0x1e4   : > { %v924_v9 = vmul.f32 %v906_v2, %v723_v38  ;;  %v911_v12 = vmul.f32 %v906_v2, %v1931_v21  ;;  %v792_v38 = vrot.slane %v1970_v46, 3 }
 0x1e6   : > { %v929_v13 = vadd.f32 %v924_v9, %v818_v4  ;;  %v800_v15 = vperm.slane %v792_v38, 0 }
 0x1e8   : > { %v934_v32 = vmul.f32 %v929_v13, %v1929_v20  ;;  %v819_v59 = vmul.f32 %v800_v15, %v626_v56  ;;  %v947_v2 = vmul.f32 %v929_v13, %v1968_v44  ;;  %v796_v56 = vrot.slane %v1970_v46, 7 }
 0x1ec   : > { %v1978_v54 = vpop.permute.xlu1 %787 }
 0x1fc   : > { %v587_v61 = vpop.permute.xlu1 %586 }
 0x1fd   : > { %v813_v0 = vmul.f32 %v797_v25, %v587_v61 }
 0x1ff   : > { %v883_v3 = vadd.f32 %v879_v62, %v813_v0 }
 0x201   : > { %v887_v7 = vmul.f32 %v883_v3, %v483_v29  ;;  %v900_v8 = vmul.f32 %v883_v3, %v704_v36 }
 0x203   : > { %v889_v10 = vadd.f32 %v888_v5, %v887_v7  ;;  %v905_v11 = vadd.f32 %v900_v8, %v815_v6  ;;  %v793_v7 = vrot.slane %v1970_v46, 4 }
 0x204   : > { %v613_v14 = vpop.permute.xlu1 %612 }
 0x205   : > { %v890_v16 = vrot.slane %v889_v10, 4  ;;  %v817_v24 = vmul.f32 %v799_v60, %v613_v14  ;;  %v910_v31 = vmul.f32 %v905_v11, %v1927_v19  ;;  %v923_v33 = vmul.f32 %v905_v11, %v717_v41  ;;  %v645_v11 = vpop.permute.xlu2 %644 }
 0x206   : > { %v801_v9 = vperm.slane %v793_v7, 0 }
 0x207   : > { %v891_v18 = vadd.f32 %v890_v16, %v889_v10  ;;  %v912_v1 = vadd.f32 %v911_v12, %v910_v31  ;;  %v928_v45 = vadd.f32 %v923_v33, %v817_v24 }
 0x208   : > { %v822_v16 = vmul.f32 %v801_v9, %v645_v11 }
 0x209   : > { %v892_v47 = vrot.slane %v891_v18, 2  ;;  %v913_v29 = vrot.slane %v912_v1, 4  ;;  %v933_v36 = vmul.f32 %v928_v45, %v1923_v17  ;;  %v946_v58 = vmul.f32 %v928_v45, %v1951_v34 }
 0x20b   : > { %v893_v25 = vadd.f32 %v892_v47, %v891_v18  ;;  %v914_v21 = vadd.f32 %v913_v29, %v912_v1  ;;  %v935_v50 = vadd.f32 %v934_v32, %v933_v36  ;;  %v951_v63 = vadd.f32 %v946_v58, %v819_v59  ;;  %v1074_v29 = vld [vmem:[#allocation12 + $0x78] sm:$0xff] }
 0x20c   : > { %1079 = vmatpush.msra.mxu0 %v1074_v29 }
 0x20d   : > { %v894_v51 = vrot.slane %v893_v25, 1  ;;  %v915_v52 = vrot.slane %v914_v21, 2  ;;  %v936_v53 = vrot.slane %v935_v50, 4  ;;  %v956_v5 = vmul.f32 %v951_v63, %v1937_v23  ;;  %v665_v47 = vpop.permute.xlu2 %664 }
 0x20e   : > { %v969_v23 = vmul.f32 %v951_v63, %v1961_v40 }
 0x20f   : > { %v895_v19 = vadd.f32 %v894_v51, %v893_v25  ;;  %v916_v41 = vadd.f32 %v915_v52, %v914_v21  ;;  %v937_v55 = vadd.f32 %v936_v53, %v935_v50  ;;  %v1072_v25 = vld [vmem:[#allocation12 + $0x68] sm:$0xff]  ;;  %v652_v21 = vpop.permute.xlu0 %651  ;;  %v1071_v51 = vld [vmem:[#allocation12 + $0x60] sm:$0xff] }
 0x211   : > { %896 = vst [vmem:[#allocation5] sm:$0x1] %v895_v19  ;;  %v917_v57 = vrot.slane %v916_v41, 1  ;;  %v938_v20 = vrot.slane %v937_v55, 2 }
 0x213   : > { %v918_v17 = vadd.f32 %v917_v57, %v916_v41  ;;  %v939_v60 = vadd.f32 %v938_v20, %v937_v55 }
 0x214   : > { %v632_v61 = vpop.permute.xlu1 %631 }
 0x215   : > { %919 = vst [vmem:[#allocation5 + $0x1] sm:$0x1] %v918_v17  ;;  %v940_v62 = vrot.slane %v939_v60, 1  ;;  %v820_v0 = vmul.f32 %v800_v15, %v632_v61  ;;  %v684_v19 = vpop.permute.xlu2 %683  ;;  %v1070_v17 = vld [vmem:[#allocation12 + $0x58] sm:$0xff] }
 0x217   : > { %v941_v3 = vadd.f32 %v940_v62, %v939_v60  ;;  %v952_v4 = vadd.f32 %v947_v2, %v820_v0  ;;  %v671_v60 = vpop.permute.xlu0 %670  ;;  %v804_v2 = vperm.slane %v796_v56, 0 }
 0x219   : > { %942 = vst [vmem:[#allocation5 + $0x2] sm:$0x1] %v941_v3  ;;  %v957_v6 = vmul.f32 %v952_v4, %v1933_v22  ;;  %v970_v14 = vmul.f32 %v952_v4, %v1956_v37  ;;  %v794_v22 = vrot.slane %v1970_v46, 5  ;;  %v1073_v37 = vld [vmem:[#allocation12 + $0x70] sm:$0xff] }
 0x21a   : > { %1080 = vmatpush.msra.mxu0 %v1073_v37  ;;  %v1069_v4 = vld [vmem:[#allocation12 + $0x50] sm:$0xff] }
 0x21b   : > { %v958_v34 = vadd.f32 %v957_v6, %v956_v5  ;;  %v975_v31 = vadd.f32 %v970_v14, %v822_v16  ;;  %v802_v36 = vperm.slane %v794_v22, 0 }
 0x21c   : > { %1081 = vmatpush.msra.mxu0 %v1072_v25 }
 0x21d   : > { %v959_v8 = vrot.slane %v958_v34, 4  ;;  %v980_v32 = vmul.f32 %v975_v31, %v1942_v27  ;;  %v823_v52 = vmul.f32 %v802_v36, %v652_v21  ;;  %v1059_v21 = vld [vmem:[#allocation12] sm:$0xff] }
 0x21e   : > { %1082 = vmatpush.msra.mxu0 %v1071_v51 }
 0x21f   : > { %v960_v10 = vadd.f32 %v959_v8, %v958_v34  ;;  %v828_v34 = vmul.f32 %v804_v2, %v684_v19  ;;  %v567_v8 = vpop.permute.xlu2 %566 }
 0x220   : > { %1083 = vmatpush.msra.mxu0 %v1070_v17 }
 0x221   : > { %v961_v12 = vrot.slane %v960_v10, 2 }
 0x222   : > { %1084 = vmatpush.msra.mxu0 %v1069_v4 }
 0x223   : > { %v962_v24 = vadd.f32 %v961_v12, %v960_v10 }
 0x224   : > { %v639_v44 = vpop.permute.xlu1 %638 }
 0x225   : > { %v963_v13 = vrot.slane %v962_v24, 1  ;;  %v821_v33 = vmul.f32 %v801_v9, %v639_v44  ;;  %v1067_v9 = vld [vmem:[#allocation12 + $0x40] sm:$0xff] }
 0x227   : > { %v964_v18 = vadd.f32 %v963_v13, %v962_v24  ;;  %v974_v1 = vadd.f32 %v969_v23, %v821_v33  ;;  %v1065_v24 = vld [vmem:[#allocation12 + $0x30] sm:$0xff]  ;;  %v1063_v23 = vld [vmem:[#allocation12 + $0x20] sm:$0xff] }
 0x229   : > { %965 = vst [vmem:[#allocation5 + $0x3] sm:$0x1] %v964_v18  ;;  %v979_v45 = vmul.f32 %v974_v1, %v1954_v35  ;;  %v992_v40 = vmul.f32 %v974_v1, %v1958_v39  ;;  %v795_v35 = vrot.slane %v1970_v46, 6  ;;  %v993_v39 = vmul.f32 %v975_v31, %v1965_v43  ;;  %v1064_v31 = vld [vmem:[#allocation12 + $0x28] sm:$0xff] }
 0x22b   : > { %v981_v38 = vadd.f32 %v980_v32, %v979_v45  ;;  %v997_v27 = vadd.f32 %v992_v40, %v823_v52  ;;  %v803_v55 = vperm.slane %v795_v35, 0  ;;  %v1062_v32 = vld [vmem:[#allocation12 + $0x18] sm:$0xff] }
 0x22d   : > { %v982_v50 = vrot.slane %v981_v38, 4  ;;  %v1015_v59 = vmul.f32 %v997_v27, %v1972_v48  ;;  %v825_v61 = vmul.f32 %v803_v55, %v665_v47  ;;  %v826_v0 = vmul.f32 %v803_v55, %v671_v60  ;;  %v1068_v48 = vld [vmem:[#allocation12 + $0x48] sm:$0xff]  ;;  %v1061_v47 = vld [vmem:[#allocation12 + $0x10] sm:$0xff] }
 0x22e   : > { %v1002_v3 = vmul.f32 %v997_v27, %v1940_v26  ;;  %1085 = vmatpush.msra.mxu0 %v1068_v48 }
 0x22f   : > { %v983_v53 = vadd.f32 %v982_v50, %v981_v38  ;;  %v1020_v43 = vadd.f32 %v1015_v59, %v825_v61  ;;  %v1060_v38 = vld [vmem:[#allocation12 + $0x8] sm:$0xff] }
 0x230   : > { %1086 = vmatpush.msra.mxu0 %v1067_v9 }
 0x231   : > { %v984_v15 = vrot.slane %v983_v53, 2  ;;  %v1025_v11 = vmul.f32 %v1020_v43, %v1949_v30  ;;  %v1038_v1 = vmul.f32 %v1020_v43, %v1975_v49  ;;  %v574_v49 = vpop.permute.xlu0 %573 }
 0x233   : > { %v985_v41 = vadd.f32 %v984_v15, %v983_v53 }
 0x234   : > { %v658_v57 = vpop.permute.xlu1 %657 }
 0x235   : > { %v986_v20 = vrot.slane %v985_v41, 1  ;;  %v824_v58 = vmul.f32 %v802_v36, %v658_v57 }
 0x237   : > { %v987_v62 = vadd.f32 %v986_v20, %v985_v41  ;;  %v998_v63 = vadd.f32 %v993_v39, %v824_v58 }
 0x239   : > { %988 = vst [vmem:[#allocation5 + $0x4] sm:$0x1] %v987_v62  ;;  %v1003_v46 = vmul.f32 %v998_v63, %v1944_v28  ;;  %v1016_v5 = vmul.f32 %v998_v63, %v1963_v42  ;;  %v1066_v28 = vld [vmem:[#allocation12 + $0x38] sm:$0xff] }
 0x23a   : > { %1087 = vmatpush.msra.mxu0 %v1066_v28 }
 0x23b   : > { %v1004_v6 = vadd.f32 %v1003_v46, %v1002_v3  ;;  %v1021_v7 = vadd.f32 %v1016_v5, %v826_v0 }
 0x23c   : > { %1088 = vmatpush.msra.mxu0 %v1065_v24 }
 0x23d   : > { %v1005_v10 = vrot.slane %v1004_v6, 4  ;;  %v1026_v26 = vmul.f32 %v1021_v7, %v567_v8  ;;  %v1039_v12 = vmul.f32 %v1021_v7, %v1978_v54 }
 0x23e   : > { %1089 = vmatpush.msra.mxu0 %v1064_v31 }
 0x23f   : > { %v1006_v14 = vadd.f32 %v1005_v10, %v1004_v6  ;;  %v1027_v42 = vadd.f32 %v1026_v26, %v1025_v11  ;;  %v1044_v16 = vadd.f32 %v1039_v12, %v828_v34 }
 0x240   : > { %1090 = vmatpush.msra.mxu0 %v1063_v23 }
 0x241   : > { %v1007_v44 = vrot.slane %v1006_v14, 2  ;;  %v1028_v13 = vrot.slane %v1027_v42, 4  ;;  %1101 = vst.msk [vmem:[%s2007_s10 + $0x8] sm:$0xff] %vm355_vm0, %v1044_v16 }
 0x242   : > { %1091 = vmatpush.msra.mxu0 %v1062_v32 }
 0x243   : > { %v1008_v30 = vadd.f32 %v1007_v44, %v1006_v14  ;;  %v1029_v33 = vadd.f32 %v1028_v13, %v1027_v42 }
 0x244   : > { %v678_v54 = vpop.permute.xlu1 %677  ;;  %1092 = vmatpush.msra.mxu0 %v1061_v47 }
 0x245   : > { %v1009_v22 = vrot.slane %v1008_v30, 1  ;;  %v827_v18 = vmul.f32 %v804_v2, %v678_v54  ;;  %v1030_v45 = vrot.slane %v1029_v33, 2 }
 0x246   : > { %1093 = vmatpush.msra.mxu0 %v1060_v38 }
 0x247   : > { %v1010_v29 = vadd.f32 %v1009_v22, %v1008_v30  ;;  %v1043_v37 = vadd.f32 %v1038_v1, %v827_v18  ;;  %v1031_v36 = vadd.f32 %v1030_v45, %v1029_v33 }
 0x248   : > { %1094 = vmatpush.msra.mxu0 %v1059_v21 }
 0x249   : > { %1011 = vst [vmem:[#allocation5 + $0x5] sm:$0x1] %v1010_v29  ;;  %v1032_v25 = vrot.slane %v1031_v36, 1  ;;  %v1048_v51 = vmul.f32 %v1043_v37, %v574_v49 }
 0x24a   : > { %1100 = vst.msk [vmem:[%s2007_s10] sm:$0xff] %vm355_vm0, %v1043_v37 }
 0x24b   : > { %v1033_v50 = vadd.f32 %v1032_v25, %v1031_v36 }
 0x24d   : > { %1034 = vst [vmem:[#allocation5 + $0x6] sm:$0x1] %v1033_v50 }
 0x254   : > { %v580_v40 = vpop.permute.xlu1 %579 }
 0x255   : > { %v1049_v52 = vmul.f32 %v1044_v16, %v580_v40 }
 0x257   : > { %v1050_v53 = vadd.f32 %v1049_v52, %v1048_v51 }
 0x259   : > { %v1051_v35 = vrot.slane %v1050_v53, 4 }
 0x25b   : > { %v1052_v15 = vadd.f32 %v1051_v35, %v1050_v53 }
 0x25d   : > { %v1053_v27 = vrot.slane %v1052_v15, 2 }
 0x25f   : > { %v1054_v19 = vadd.f32 %v1053_v27, %v1052_v15 }
 0x261   : > { %v1055_v41 = vrot.slane %v1054_v19, 1 }
 0x263   : > { %v1056_v55 = vadd.f32 %v1055_v41, %v1054_v19 }
 0x265   : > { %1057 = vst [vmem:[#allocation5 + $0x7] sm:$0x1] %v1056_v55 }
 0x26c   : > { %v1058_v56 = vld [vmem:[#allocation5] sm:$0xff] }
 0x26d   : > { %1095 = vmatmul.f32.vlgmr.msra.gmra.mxu0 %v1058_v56 }
 0x26e   : > { %1587 = shalt.err (!%p1584_p9)
}
 0x26f   : > { %s1675_s10 = smov 128   ;;  %s1676_s19 = smov 8   ;;  %v1431_v57 = vld [vmem:[%s2072_s4] ss:$0 sm:$0xff] }
 0x270   : > { %1316 = dma.vmem_to_hbm [thread:$0]  (%p1788_p13), %s1135_s8, 256, %s1137_s16, %s1108_s14, %s1675_s10, %s1675_s10, %s1676_s19  }
 0x271   : > { %s1295_s25 = sshll.u32 %s1736_s28, 3  ;;  %s2084_s17 = sshll.u32 %s1819_s12, 3 }
 0x272   : > { %s1118_s15 = scalar_lea.hbm %s2073_s5, %s1295_s25  ;;  %s320_s18 = scalar_lea.vmem [#allocation14], %s2084_s17 }
 0x273   : > { %s1120_s7 = sshll.u32 %s320_s18, 4  ;;  %s1122_s29 = sshll.u32 %s1118_s15, 4  ;;  %s1121_s7 = int_to_ptr.vmem [resolvable:$true] %s1120_s7  ;;  %s1123_s29 = int_to_ptr.hbm [resolvable:$true] %s1122_s29 }
 0x274   : > { %s1103_s8 = scalar_lea.sflag [#allocation8], %s1819_s12  ;;  %s1602_s28 = sshra.s32 %s1123_s29, 4  ;;  %s1603_s28 = int_to_ptr.hbm [resolvable:$true] %s1602_s28 }
 0x275   : > { %s1604_s16 = scalar_lea.hbm %s1603_s28, 8  ;;  %s1608_s19 = scalar_lea.hbm %s2073_s5, 16 }
 0x276   : > { %p1605_p10 = scmp.ne.s32.totalorder %s1603_s28, %s1604_s16  ;;  %p1609_p2 = scmp.lt.s32.totalorder %s1603_s28, %s2073_s5 }
 0x277   : > { %p1610_p6 = scmp.lt.s32.totalorder %s1608_s19, %s1604_s16 }
 0x278   : > { %p1606_p11 = pnand %p1605_p10, %p1788_p13 }
 0x279   : > { %p1611_p1 = por %p1610_p6, %p1609_p2 }
 0x27a   : > { %p1607_p0 = pneg %p1606_p11 }
 0x27c   : > { %p1612_p3 = pnand %p1611_p1, %p1607_p0 }
 0x2ea   : > { %v1096_v20 = vpop.f32.mrf.mxu0 }
 0x2eb   : > { %v1097_v58 = vadd.f32 %v1431_v57, %v1096_v20 }
 0x2ed   : > { %1099 = vst [vmem:[%s320_s18] sm:$0xff] %v1097_v58 }
 0x2ee   : > { %1615 = shalt.err (!%p1612_p3)
}
 0x2ef   : > { %1315 = dma.vmem_to_hbm [thread:$0]  (%p1788_p13), %s1121_s7, 128, %s1123_s29, %s1103_s8  }
 0x2f0 PF: > { %s1151_s12 = sand.u32 1, %s1654_s21   ;;  %p2085_p5 = scmp.ge.s32.totalorder %s1666_s24, 2 }
 0x2f1   : > { %s1152_s30 = scalar_lea.sflag [#allocation8], %s1151_s12 }
 0x2f2   : > { %p1334_p12 = pnand %p2085_p5, %p1793_p4 }
 0x2f4   : > { %p1335_p8 = pneg %p1334_p12 }
 0x2f6   : > { %1645 = dma.done.wait (%p1335_p8), %s1152_s30, 128  }
 0x2f7   : > { %1647 = vsyncadd (%p1335_p8), %s1152_s30, 4294967168  ;;  %s1162_s15 = scalar_lea.sflag [#allocation16], %s1151_s12 }
 0x2f8   : > { %1649 = dma.done.wait (%p1335_p8), %s1162_s15, 256  }
 0x2f9   : > { %1651 = vsyncadd (%p1335_p8), %s1162_s15, 4294967040  ;;  %p25_p13 = scmp.ge.s32.totalorder %s1768_s27, 4   ;;  %s2086_s21 = smov %s1658_s22 }
 0x2fa   : > { %s2087_s22 = smov %s1662_s23  ;;  %s2088_s23 = smov %s1780_s9 }
 0x2fb   : > { %s2089_s24 = smov %s1768_s27  ;;  %27 = sbr.rel (!%p25_p13) target bundleno = 11 (0xb), region = 135 }
 0x300   :  { %1168 = vsyncpa [#allocation7], 1 }
 0x301   :  { %1170 = vsyncpa [#allocation7 + $0x1], 1 }
 0x302   :  { %1171 = vsyncpa [#allocation10], 1 }
 0x303   :  { %1172 = vsyncpa [#allocation13], 1 }
 0x304   :  { %1173 = vsyncpa [#allocation8], 1 }
 0x305   :  { %1175 = vsyncpa [#allocation8 + $0x1], 1 }
 0x306   :  { %1176 = vsyncpa [#allocation16], 1 }
 0x307   :  { %1178 = vsyncpa [#allocation16 + $0x1], 1 }

</bundles_post_ra>
